<compile_context>
chip_gen: v6e
topology: v6e:2x2x1
jax: 0.10.0
libtpu: 0.0.40
codegen_flags: <defaults>
</compile_context>

<pallas_src>
import functools
import math

import jax
import jax.numpy as jnp
from jax.experimental import pallas as pl
from jax.experimental.pallas import tpu as pltpu


def _round_up(x, m):
    return ((x + m - 1) // m) * m


# ------------------------------------------------------------------ kernels --
def _matmul_bias_act_kernel(x_ref, w_ref, b_ref, o_ref, *, apply_relu):
    # x_ref: (TP, K) patch/feature tile  (channels-last, im2col rows)
    # w_ref: (K, C)  weight, already transposed for right-multiplication
    # b_ref: (1, C)  bias
    # o_ref: (TP, C)
    acc = jnp.dot(x_ref[...], w_ref[...], preferred_element_type=jnp.float32)
    acc = acc + b_ref[...]
    if apply_relu:
        acc = jnp.maximum(acc, 0.0)
    o_ref[...] = acc.astype(o_ref.dtype)


def _conv_maxpool_fc_kernel(x_ref, wc_ref, bc_ref, *rest, num_fc):
    # One image per grid step.
    #   x_ref : (1, HW, K)  im2col patches of the final conv
    #   wc_ref: (K, Cc)     final-conv weight (no activation)
    #   bc_ref: (1, Cc)
    #   rest  : (w0, b0, w1, b1, ..., o_ref)   FC stack + output
    # conv output (HW, Cc), its global max (1, Cc) and every FC intermediate
    # stay on-chip; only the (1, Fout) result is written back.
    o_ref = rest[-1]
    fc_refs = rest[:-1]
    y = jnp.dot(x_ref[0], wc_ref[...], preferred_element_type=jnp.float32)
    y = y + bc_ref[...]
    y = jnp.max(y, axis=0, keepdims=True)            # AdaptiveMaxPool2d(1)
    for i in range(num_fc):
        w = fc_refs[2 * i][...]
        b = fc_refs[2 * i + 1][...]
        y = jnp.dot(y, w, preferred_element_type=jnp.float32) + b
        if i < num_fc - 1:                           # last DenseBlock: no act
            y = jnp.maximum(y, 0.0)
    o_ref[0] = y.astype(o_ref.dtype)


# ----------------------------------------------------------------- wrappers --
def matmul_bias_act(x, w, b, *, relu, tile_p=256):
    """out = act(x @ w + b), tiled over rows of x.  x: (P, K), w: (K, C)."""
    p, k = x.shape
    c = w.shape[1]
    block_p = min(tile_p, _round_up(p, 8))
    p_pad = _round_up(p, block_p)
    if p_pad != p:
        x = jnp.pad(x, ((0, p_pad - p), (0, 0)))
    out = pl.pallas_call(
        functools.partial(_matmul_bias_act_kernel, apply_relu=relu),
        out_shape=jax.ShapeDtypeStruct((p_pad, c), jnp.float32),
        grid_spec=pltpu.PrefetchScalarGridSpec(
            num_scalar_prefetch=0,
            grid=(p_pad // block_p,),
            in_specs=[
                pl.BlockSpec((block_p, k), lambda i: (i, 0)),
                pl.BlockSpec((k, c), lambda i: (0, 0)),
                pl.BlockSpec((1, c), lambda i: (0, 0)),
            ],
            out_specs=pl.BlockSpec((block_p, c), lambda i: (i, 0)),
        ),
        compiler_params=pltpu.CompilerParams(
            dimension_semantics=("parallel",)),
    )(x, w, b.reshape(1, c))
    return out[:p]


def _extract_patches(x_nhwc, ksize, stride):
    """Replicate-padded im2col.  Output (N, Ho, Wo, ksize*ksize*C); patch
    channel order is [dy, dx, c] (matches an HWIO weight reshape)."""
    if ksize == 1:
        patches = x_nhwc
    else:
        pad = ksize // 2
        xp = jnp.pad(x_nhwc, ((0, 0), (pad, pad), (pad, pad), (0, 0)),
                     mode='edge')
        h, w = x_nhwc.shape[1], x_nhwc.shape[2]
        views = [xp[:, dy:dy + h, dx:dx + w, :]
                 for dy in range(ksize) for dx in range(ksize)]
        patches = jnp.concatenate(views, axis=-1)
    if stride > 1:
        patches = patches[:, ::stride, ::stride, :]
    return patches


def conv2d_block(x_nhwc, w_mat, b, *, ksize, stride, relu, tile_p=256):
    """Conv2DBlock: k x k conv (replicate padding), bias, optional ReLU."""
    patches = _extract_patches(x_nhwc, ksize, stride)
    n, ho, wo, kdim = patches.shape
    out = matmul_bias_act(patches.reshape(n * ho * wo, kdim), w_mat, b,
                          relu=relu, tile_p=tile_p)
    return out.reshape(n, ho, wo, w_mat.shape[1])


def conv_maxpool_fc(x_nhwc, w_mat, b, fc_params, *, ksize, stride):
    """Final Conv2DBlock (no activation) + AdaptiveMaxPool2d(1) + FC stack,
    all fused in a single pallas_call (one image per grid step)."""
    patches = _extract_patches(x_nhwc, ksize, stride)
    n, ho, wo, kdim = patches.shape
    hw = ho * wo
    xk = patches.reshape(n, hw, kdim)
    hw_pad = _round_up(hw, 8)
    if hw_pad != hw:
        # Edge-replicated rows leave the row-wise max unchanged.
        xk = jnp.pad(xk, ((0, 0), (0, hw_pad - hw), (0, 0)), mode='edge')
    cout = w_mat.shape[1]
    num_fc = len(fc_params)
    fout = fc_params[-1][0].shape[1]

    in_specs = [
        pl.BlockSpec((1, hw_pad, kdim), lambda i: (i, 0, 0)),
        pl.BlockSpec((kdim, cout), lambda i: (0, 0)),
        pl.BlockSpec((1, cout), lambda i: (0, 0)),
    ]
    fc_args = []
    for (w_fc, b_fc) in fc_params:
        kf, cf = w_fc.shape
        in_specs.append(pl.BlockSpec((kf, cf), lambda i: (0, 0)))
        in_specs.append(pl.BlockSpec((1, cf), lambda i: (0, 0)))
        fc_args.extend([w_fc, b_fc.reshape(1, cf)])

    out = pl.pallas_call(
        functools.partial(_conv_maxpool_fc_kernel, num_fc=num_fc),
        out_shape=jax.ShapeDtypeStruct((n, 1, fout), jnp.float32),
        grid_spec=pltpu.PrefetchScalarGridSpec(
            num_scalar_prefetch=0,
            grid=(n,),
            in_specs=in_specs,
            out_specs=pl.BlockSpec((1, 1, fout), lambda i: (i, 0, 0)),
        ),
        compiler_params=pltpu.CompilerParams(
            dimension_semantics=("parallel",)),
    )(xk, w_mat, b.reshape(1, cout), *fc_args)
    return out.reshape(n, fout)


# -------------------------------------------------------------- full forward --
def cnn_and_fcs_forward(params, observations, low_dim_ins, *, tile_p=256):
    # ---- SiameseNet: per-stream conv stacks + 1x1 fuse conv (all ReLU) ----
    streams = []
    for obs, blocks in zip(observations, params['siamese']):
        y = jnp.transpose(obs, (0, 2, 3, 1))          # NCHW -> NHWC
        for (w, b, k, s) in blocks:
            y = conv2d_block(y, w, b, ksize=k, stride=s, relu=True,
                             tile_p=tile_p)
        streams.append(y)
    y = jnp.concatenate(streams, axis=-1)
    wf, bf = params['fuse']
    y = conv2d_block(y, wf, bf, ksize=1, stride=1, relu=True, tile_p=tile_p)

    # ---- tile the low-dim state spatially and concat on channels ----
    n, h, w_, _ = y.shape
    low = jnp.broadcast_to(low_dim_ins[:, None, None, :],
                           (n, h, w_, low_dim_ins.shape[-1]))
    y = jnp.concatenate([y, low], axis=-1)

    # ---- CNN stack (all but last with ReLU) ----
    for (w, b, k, s) in params['cnn'][:-1]:
        y = conv2d_block(y, w, b, ksize=k, stride=s, relu=True, tile_p=tile_p)

    # ---- final conv (no act) + global max pool + FC stack, one kernel ----
    w, b, k, s = params['cnn'][-1]
    return conv_maxpool_fc(y, w, b, params['fcs'], ksize=k, stride=s)


# ------------------------------------------------------- parameter creation --
def _kaiming_uniform(key, fan_in, shape):
    bound = math.sqrt(2.0) * math.sqrt(3.0 / fan_in)      # relu gain
    return jax.random.uniform(key, shape, jnp.float32, -bound, bound)


def _xavier_uniform(key, fan_in, fan_out, shape):
    bound = math.sqrt(6.0 / (fan_in + fan_out))
    return jax.random.uniform(key, shape, jnp.float32, -bound, bound)


def init_params(key, *, input_channels, siam_filters, siam_kernel_sizes,
                siam_strides, low_dim_state_len, cnn_filters, cnn_kernel_sizes,
                cnn_strides, fc_layers):
    """Weights stored directly as (ksize*ksize*Cin, Cout) matrices (row order
    [dy, dx, cin]) so the kernels never transpose.  Init mirrors the PyTorch
    module: kaiming_uniform for ReLU layers, xavier_uniform for linear ones,
    zero biases."""
    n_keys = (len(input_channels) * len(siam_filters) + 1
              + len(cnn_filters) + len(fc_layers))
    keys = iter(jax.random.split(key, n_keys))

    siamese = []
    for ch in input_channels:
        cin = ch
        blocks = []
        for filt, k, s in zip(siam_filters, siam_kernel_sizes, siam_strides):
            fan_in = cin * k * k
            w = _kaiming_uniform(next(keys), fan_in, (fan_in, filt))
            blocks.append((w, jnp.zeros((filt,), jnp.float32), k, s))
            cin = filt
        siamese.append(blocks)

    fuse_in = siam_filters[-1] * len(input_channels)
    fuse = (_kaiming_uniform(next(keys), fuse_in, (fuse_in, siam_filters[-1])),
            jnp.zeros((siam_filters[-1],), jnp.float32))

    cnn = []
    cin = siam_filters[-1] + low_dim_state_len
    n_cnn = len(cnn_filters)
    for i, (filt, k, s) in enumerate(zip(cnn_filters, cnn_kernel_sizes,
                                         cnn_strides)):
        fan_in = cin * k * k
        if i == n_cnn - 1:   # last CNN conv: activation=None -> xavier
            w = _xavier_uniform(next(keys), fan_in, filt, (fan_in, filt))
        else:
            w = _kaiming_uniform(next(keys), fan_in, (fan_in, filt))
        cnn.append((w, jnp.zeros((filt,), jnp.float32), k, s))
        cin = filt

    fcs = []
    cin = cnn_filters[-1]
    n_fc = len(fc_layers)
    for i, n_out in enumerate(fc_layers):
        if i == n_fc - 1:    # last dense: activation=None -> xavier
            w = _xavier_uniform(next(keys), cin, n_out, (cin, n_out))
        else:
            w = _kaiming_uniform(next(keys), cin, (cin, n_out))
        fcs.append((w, jnp.zeros((n_out,), jnp.float32)))
        cin = n_out

    return {'siamese': siamese, 'fuse': fuse, 'cnn': cnn, 'fcs': fcs}


# ------------------------------------------------------------ JAX reference --
def _ref_conv(x_nhwc, w_mat, b, ksize, stride, relu):
    cin = x_nhwc.shape[-1]
    cout = w_mat.shape[1]
    w4 = w_mat.reshape(ksize, ksize, cin, cout)            # HWIO
    pad = ksize // 2
    xp = jnp.pad(x_nhwc, ((0, 0), (pad, pad), (pad, pad), (0, 0)),
                 mode='edge')
    y = jax.lax.conv_general_dilated(
        xp, w4, window_strides=(stride, stride), padding='VALID',
        dimension_numbers=('NHWC', 'HWIO', 'NHWC'))
    y = y + b
    return jnp.maximum(y, 0.0) if relu else y


def reference_forward(params, observations, low_dim_ins):
    streams = []
    for obs, blocks in zip(observations, params['siamese']):
        y = jnp.transpose(obs, (0, 2, 3, 1))
        for (w, b, k, s) in blocks:
            y = _ref_conv(y, w, b, k, s, True)
        streams.append(y)
    y = jnp.concatenate(streams, axis=-1)
    wf, bf = params['fuse']
    y = _ref_conv(y, wf, bf, 1, 1, True)
    n, h, w_, _ = y.shape
    low = jnp.broadcast_to(low_dim_ins[:, None, None, :],
                           (n, h, w_, low_dim_ins.shape[-1]))
    y = jnp.concatenate([y, low], axis=-1)
    for (w, b, k, s) in params['cnn'][:-1]:
        y = _ref_conv(y, w, b, k, s, True)
    w, b, k, s = params['cnn'][-1]
    y = _ref_conv(y, w, b, k, s, False)
    y = jnp.max(y, axis=(1, 2))
    for (w, b) in params['fcs'][:-1]:
        y = jnp.maximum(y @ w + b, 0.0)
    w, b = params['fcs'][-1]
    return y @ w + b


# --------------------------------------------------------------------- main --
if __name__ == "__main__":
    key = jax.random.PRNGKey(0)
    k_obs0, k_obs1, k_low, k_params = jax.random.split(key, 4)

    # Small configuration consistent with the module's constructor.
    N = 2
    H = W = 16
    INPUT_CHANNELS = [4, 4]          # two siamese streams
    SIAM_FILTERS = [8, 16]
    SIAM_KSIZES = [3, 3]
    SIAM_STRIDES = [1, 1]
    LOW_DIM_STATE_LEN = 4
    CNN_FILTERS = [16, 16]
    CNN_KSIZES = [3, 3]
    CNN_STRIDES = [1, 1]
    FC_LAYERS = [32, 8]

    observations = [
        jax.random.normal(k_obs0, (N, INPUT_CHANNELS[0], H, W), jnp.float32),
        jax.random.normal(k_obs1, (N, INPUT_CHANNELS[1], H, W), jnp.float32),
    ]
    low_dim_ins = jax.random.normal(k_low, (N, LOW_DIM_STATE_LEN), jnp.float32)

    params = init_params(
        k_params,
        input_channels=INPUT_CHANNELS,
        siam_filters=SIAM_FILTERS,
        siam_kernel_sizes=SIAM_KSIZES,
        siam_strides=SIAM_STRIDES,
        low_dim_state_len=LOW_DIM_STATE_LEN,
        cnn_filters=CNN_FILTERS,
        cnn_kernel_sizes=CNN_KSIZES,
        cnn_strides=CNN_STRIDES,
        fc_layers=FC_LAYERS,
    )

    out = cnn_and_fcs_forward(params, observations, low_dim_ins)
    out = jax.block_until_ready(out)
    assert out.shape == (N, FC_LAYERS[-1]), out.shape

    ref = reference_forward(params, observations, low_dim_ins)
    max_err = float(jnp.max(jnp.abs(out - ref)))
    assert jnp.allclose(out, ref, atol=1e-4, rtol=1e-4), max_err

    print("KERNEL_OK")
</pallas_src>

<mosaic_0001>
module attributes {stable_mosaic.version = 11 : i64} {
  func.func @_matmul_bias_act_kernel(%arg0: i32, %arg1: memref<256x36xf32, #tpu.memory_space<vmem>>, %arg2: memref<36x8xf32, #tpu.memory_space<vmem>>, %arg3: memref<1x8xf32, #tpu.memory_space<vmem>>, %arg4: memref<256x8xf32, #tpu.memory_space<vmem>>) attributes {dimension_semantics = [#tpu.dimension_semantics<parallel>], iteration_bounds = array<i64: 2>, scalar_prefetch = 0 : i64, scratch_operands = 0 : i64, tpu.core_type = #tpu.core_type<tc>, window_params = [{transform_indices = @transform_0, window_bounds = array<i64: 256, 36>}, {pipeline_mode = #tpu.pipeline_mode<synchronous>, transform_indices = @transform_1, window_bounds = array<i64: 36, 8>}, {pipeline_mode = #tpu.pipeline_mode<synchronous>, transform_indices = @transform_2, window_bounds = array<i64: 1, 8>}, {transform_indices = @transform_3, window_bounds = array<i64: 256, 8>}]} {
    %c0 = arith.constant 0 : index
    %c0_0 = arith.constant 0 : index
    %0 = vector.load %arg1[%c0, %c0_0] : memref<256x36xf32, #tpu.memory_space<vmem>>, vector<256x36xf32>
    %c0_1 = arith.constant 0 : index
    %c0_2 = arith.constant 0 : index
    %1 = vector.load %arg2[%c0_1, %c0_2] : memref<36x8xf32, #tpu.memory_space<vmem>>, vector<36x8xf32>
    %cst = arith.constant dense<0.000000e+00> : vector<256x8xf32>
    %2 = tpu.matmul %0, %1, %cst {dimension_numbers = #tpu.dot_dimension_numbers<[1], [0], [0], [1], [0, 0, 1, 1], [], []>} : vector<256x36xf32>, vector<36x8xf32>, vector<256x8xf32> -> vector<256x8xf32>
    %c0_3 = arith.constant 0 : index
    %c0_4 = arith.constant 0 : index
    %3 = vector.load %arg3[%c0_3, %c0_4] : memref<1x8xf32, #tpu.memory_space<vmem>>, vector<1x8xf32>
    %4 = vector.broadcast %3 : vector<1x8xf32> to vector<256x8xf32>
    %5 = arith.addf %2, %4 : vector<256x8xf32>
    %cst_5 = arith.constant 0.000000e+00 : f32
    %6 = vector.broadcast %cst_5 : f32 to vector<256x8xf32>
    %7 = arith.maximumf %5, %6 : vector<256x8xf32>
    %c0_6 = arith.constant 0 : index
    %c0_7 = arith.constant 0 : index
    %8 = vector.load %arg4[%c0_6, %c0_7] : memref<256x8xf32, #tpu.memory_space<vmem>>, vector<256x8xf32>
    tpu.vector_store %arg4[%c0_6, %c0_7], %7 {strides = array<i32>} : memref<256x8xf32, #tpu.memory_space<vmem>>, vector<256x8xf32>,
    return
  }
  func.func @transform_0(%arg0: i32) -> (i32, i32) {
    %c0_i32 = arith.constant 0 : i32
    %c0_i32_0 = arith.constant 0 : i32
    return %arg0, %c0_i32 : i32, i32
  }
  func.func @transform_1(%arg0: i32) -> (i32, i32) {
    %c0_i32 = arith.constant 0 : i32
    %c0_i32_0 = arith.constant 0 : i32
    %c0_i32_1 = arith.constant 0 : i32
    return %c0_i32, %c0_i32_0 : i32, i32
  }
  func.func @transform_2(%arg0: i32) -> (i32, i32) {
    %c0_i32 = arith.constant 0 : i32
    %c0_i32_0 = arith.constant 0 : i32
    %c0_i32_1 = arith.constant 0 : i32
    return %c0_i32, %c0_i32_0 : i32, i32
  }
  func.func @transform_3(%arg0: i32) -> (i32, i32) {
    %c0_i32 = arith.constant 0 : i32
    %c0_i32_0 = arith.constant 0 : i32
    return %arg0, %c0_i32 : i32, i32
  }
}

</mosaic_0001>

<bundles_post_ra>
// kernel: tpu_custom_call.1
= control target key start
LH: loop header
LB: loop body
LE: loop exit
PB: predicated region body
PF: predicated region fallthrough
CT: control target
= control target key end

     0   :  { %s851_s12 = smov 0   ;;  %s1059_s0 = inlined_call_operand.vmem [shape: f32[512,36], index: 0, kind: input, shape index: {}]   ;;  %s1060_s1 = inlined_call_operand.vmem [shape: f32[36,8], index: 1, kind: input, shape index: {}]   ;;  %s1061_s2 = inlined_call_operand.vmem [shape: f32[1,8], index: 2, kind: input, shape index: {}]   ;;  %s1062_s3 = inlined_call_operand.vmem [shape: f32[512,8], index: 3, kind: output, shape index: {}]  }
   0x1 LB: > { %s665_s13 = sadd.s32 4294967295, %s829_s12   ;;  %p669_p0 = scmp.ge.s32.totalorder %s829_s12, 1  ;;  %s829_s12 = sphi %s851_s12, %s13_s12  }
   0x2   : > { %p138_p1 = scmp.lt.s32.totalorder %s829_s12, 3 }
   0x4   : > { %p139_p2 = pnand %p669_p0, %p138_p1 }
   0x5   : > { %s670_s18 = sshll.u32 (!%p139_p2), %s665_s13, 5 }
   0x6   : > { %142 = sbr.rel (%p139_p2) target bundleno = 251 (0xfb), region = 32  ;;  %p163_p3 = scmp.lt.s32.totalorder (!%p139_p2), %s670_s18, 63 }
   0xb   : > { %v210_v0 = vld [vmem:[%s1060_s1 + $0x20] sm:$0xf]  ;;  %vm315_vm0 = vcmask 1043456   ;;  %v209_v1 = vld [vmem:[%s1060_s1 + $0x18] sm:$0xff]  ;;  %v208_v2 = vld [vmem:[%s1060_s1 + $0x10] sm:$0xff]  ;;  %s1064_s18 = smov (!%p163_p3, %s670_s18), 63 }
   0xc   : > { %747 = vmatprep.subr.msk.mxu0 %vm315_vm0, %v210_v0  ;;  %805 = vmatprep.subr.msk.mxu1 %vm315_vm0, %v210_v0  ;;  %v207_v3 = vld [vmem:[%s1060_s1 + $0x8] sm:$0xff]  ;;  %s671_s23 = sshll.u32 %s1064_s18, 3  ;;  %v206_v4 = vld [vmem:[%s1060_s1] sm:$0xff]  ;;  %vm218_vm1 = vcmask 293888   ;;  %vm576_vm2 = vcmask 64512  }
   0xd   : > { %748 = vmatpush3.msk.msra.mxu0 %vm315_vm0, %v210_v0  ;;  %810 = vmatpush3.msk.msra.mxu1 %vm315_vm0, %v210_v0  ;;  %s882_s28 = scalar_lea.vmem %s1059_s0, %s671_s23  ;;  %v951_v37 = vld [vmem:[%s1061_s2] ss:$0 sm:$0xff]  ;;  %s960_s6 = scalar_lea.vmem %s1062_s3, %s671_s23 }
   0xe   : > { %749 = vmatprep.subr.mxu0 %v209_v1  ;;  %806 = vmatprep.subr.mxu1 %v209_v1  ;;  %v174_v5 = vld [vmem:[%s882_s28] sm:$0xff]  ;;  %v175_v7 = vld [vmem:[%s882_s28 + $0x8] sm:$0xff]  ;;  %v176_v9 = vld [vmem:[%s882_s28 + $0x10] sm:$0xff] }
   0xf   : > { %750 = vmatpush3.msra.mxu0 %v209_v1  ;;  %811 = vmatpush3.msra.mxu1 %v209_v1  ;;  %v190_v6 = vld [vmem:[%s882_s28 + $0x80] sm:$0xff]  ;;  %v191_v8 = vld [vmem:[%s882_s28 + $0x88] sm:$0xff]  ;;  %v192_v10 = vld [vmem:[%s882_s28 + $0x90] sm:$0xff] }
  0x10   : > { %751 = vmatprep.subr.mxu0 %v208_v2  ;;  %807 = vmatprep.subr.mxu1 %v208_v2  ;;  %v177_v11 = vld [vmem:[%s882_s28 + $0x18] sm:$0xff]  ;;  %v178_v13 = vld [vmem:[%s882_s28 + $0x20] sm:$0xff]  ;;  %v179_v15 = vld [vmem:[%s882_s28 + $0x28] sm:$0xff] }
  0x11   : > { %752 = vmatpush3.msra.mxu0 %v208_v2  ;;  %812 = vmatpush3.msra.mxu1 %v208_v2  ;;  %v193_v12 = vld [vmem:[%s882_s28 + $0x98] sm:$0xff]  ;;  %v194_v14 = vld [vmem:[%s882_s28 + $0xa0] sm:$0xff]  ;;  %v195_v16 = vld [vmem:[%s882_s28 + $0xa8] sm:$0xff] }
  0x12   : > { %753 = vmatprep.subr.mxu0 %v207_v3  ;;  %808 = vmatprep.subr.mxu1 %v207_v3  ;;  %v180_v17 = vld [vmem:[%s882_s28 + $0x30] sm:$0xff]  ;;  %v181_v19 = vld [vmem:[%s882_s28 + $0x38] sm:$0xff]  ;;  %v182_v21 = vld [vmem:[%s882_s28 + $0x40] sm:$0xff] }
  0x13   : > { %754 = vmatpush3.msra.mxu0 %v207_v3  ;;  %813 = vmatpush3.msra.mxu1 %v207_v3  ;;  %v196_v18 = vld [vmem:[%s882_s28 + $0xb0] sm:$0xff]  ;;  %v197_v20 = vld [vmem:[%s882_s28 + $0xb8] sm:$0xff]  ;;  %v198_v22 = vld [vmem:[%s882_s28 + $0xc0] sm:$0xff] }
  0x14   : > { %755 = vmatprep.subr.mxu0 %v206_v4  ;;  %809 = vmatprep.subr.mxu1 %v206_v4  ;;  %v183_v23 = vld [vmem:[%s882_s28 + $0x48] sm:$0xff]  ;;  %v184_v25 = vld [vmem:[%s882_s28 + $0x50] sm:$0xff]  ;;  %v185_v27 = vld [vmem:[%s882_s28 + $0x58] sm:$0xff] }
  0x15   : > { %756 = vmatpush3.msra.mxu0 %v206_v4  ;;  %814 = vmatpush3.msra.mxu1 %v206_v4  ;;  %v199_v24 = vld [vmem:[%s882_s28 + $0xc8] sm:$0xff]  ;;  %v200_v26 = vld [vmem:[%s882_s28 + $0xd0] sm:$0xff]  ;;  %v201_v28 = vld [vmem:[%s882_s28 + $0xd8] sm:$0xff] }
  0x16   : > { %757 = vmatprep.mubr.msk.f32.mxu0 %vm218_vm1, %v174_v5  ;;  %781 = vmatprep.mubr.msk.f32.mxu1 %vm218_vm1, %v190_v6  ;;  %v186_v29 = vld [vmem:[%s882_s28 + $0x60] sm:$0xff]  ;;  %v187_v31 = vld [vmem:[%s882_s28 + $0x68] sm:$0xff]  ;;  %v188_v33 = vld [vmem:[%s882_s28 + $0x70] sm:$0xff] }
  0x17   : > { %758 = vmatmul.mubr.msk.f32.vlgmr.msra.gmra.mxu0 %vm218_vm1, %v175_v7  ;;  %782 = vmatmul.mubr.msk.f32.vlgmr.msra.gmra.mxu1 %vm218_vm1, %v191_v8  ;;  %v202_v30 = vld [vmem:[%s882_s28 + $0xe0] sm:$0xff]  ;;  %v203_v32 = vld [vmem:[%s882_s28 + $0xe8] sm:$0xff]  ;;  %v204_v34 = vld [vmem:[%s882_s28 + $0xf0] sm:$0xff] }
  0x18   : > { %760 = vmatprep.mubr.msk.f32.mxu0 %vm218_vm1, %v176_v9  ;;  %784 = vmatprep.mubr.msk.f32.mxu1 %vm218_vm1, %v192_v10  ;;  %v189_v35 = vld [vmem:[%s882_s28 + $0x78] sm:$0xff] }
  0x19   : > { %v205_v36 = vld [vmem:[%s882_s28 + $0xf8] sm:$0xff] }
  0x1b   : > { %761 = vmatmul.mubr.msk.f32.gmra.mxu0 %vm218_vm1, %v177_v11  ;;  %785 = vmatmul.mubr.msk.f32.gmra.mxu1 %vm218_vm1, %v193_v12 }
  0x1c   : > { %763 = vmatprep.mubr.msk.f32.mxu0 %vm218_vm1, %v178_v13  ;;  %787 = vmatprep.mubr.msk.f32.mxu1 %vm218_vm1, %v194_v14 }
  0x1f   : > { %764 = vmatmul.mubr.msk.f32.gmra.mxu0 %vm218_vm1, %v179_v15  ;;  %788 = vmatmul.mubr.msk.f32.gmra.mxu1 %vm218_vm1, %v195_v16 }
  0x20   : > { %766 = vmatprep.mubr.msk.f32.mxu0 %vm218_vm1, %v180_v17  ;;  %790 = vmatprep.mubr.msk.f32.mxu1 %vm218_vm1, %v196_v18 }
  0x23   : > { %767 = vmatmul.mubr.msk.f32.gmra.mxu0 %vm218_vm1, %v181_v19  ;;  %791 = vmatmul.mubr.msk.f32.gmra.mxu1 %vm218_vm1, %v197_v20 }
  0x24   : > { %769 = vmatprep.mubr.msk.f32.mxu0 %vm218_vm1, %v182_v21  ;;  %793 = vmatprep.mubr.msk.f32.mxu1 %vm218_vm1, %v198_v22 }
  0x27   : > { %770 = vmatmul.mubr.msk.f32.gmra.mxu0 %vm218_vm1, %v183_v23  ;;  %794 = vmatmul.mubr.msk.f32.gmra.mxu1 %vm218_vm1, %v199_v24 }
  0x28   : > { %772 = vmatprep.mubr.msk.f32.mxu0 %vm218_vm1, %v184_v25  ;;  %796 = vmatprep.mubr.msk.f32.mxu1 %vm218_vm1, %v200_v26 }
  0x2b   : > { %773 = vmatmul.mubr.msk.f32.gmra.mxu0 %vm218_vm1, %v185_v27  ;;  %797 = vmatmul.mubr.msk.f32.gmra.mxu1 %vm218_vm1, %v201_v28 }
  0x2c   : > { %775 = vmatprep.mubr.msk.f32.mxu0 %vm218_vm1, %v186_v29  ;;  %799 = vmatprep.mubr.msk.f32.mxu1 %vm218_vm1, %v202_v30 }
  0x2f   : > { %776 = vmatmul.mubr.msk.f32.gmra.mxu0 %vm218_vm1, %v187_v31  ;;  %800 = vmatmul.mubr.msk.f32.gmra.mxu1 %vm218_vm1, %v203_v32 }
  0x30   : > { %778 = vmatprep.mubr.msk.f32.mxu0 %vm218_vm1, %v188_v33  ;;  %802 = vmatprep.mubr.msk.f32.mxu1 %vm218_vm1, %v204_v34 }
  0x33   : > { %779 = vmatmul.mubr.msk.f32.gmra.mxu0 %vm218_vm1, %v189_v35  ;;  %803 = vmatmul.mubr.msk.f32.gmra.mxu1 %vm218_vm1, %v205_v36 }
  0xd7   : > { %v759_v38 = vpop.f32.mrf.mxu0  ;;  %v783_v39 = vpop.f32.mrf.mxu1 }
  0xd8   : > { %v391_v40 = vadd.f32 %v759_v38, %v951_v37  ;;  %v471_v41 = vadd.f32 %v783_v39, %v951_v37 }
  0xd9   : > { %v385_v42 = vpop.f32.mrf.mxu0  ;;  %v465_v43 = vpop.f32.mrf.mxu1 }
  0xda   : > { %v545_v44 = vmax.f32 %v391_v40, 0.0  ;;  %v561_v45 = vmax.f32 %v471_v41, 0.0  ;;  %v386_v46 = vadd.f32 %v951_v37, %v385_v42  ;;  %v466_v47 = vadd.f32 %v951_v37, %v465_v43 }
  0xdb   : > { %v762_v48 = vpop.f32.mrf.mxu0  ;;  %v786_v49 = vpop.f32.mrf.mxu1 }
  0xdc   : > { %578 = vst.msk [vmem:[%s960_s6 + $0x8] sm:$0xff] %vm576_vm2, %v545_v44  ;;  %594 = vst.msk [vmem:[%s960_s6 + $0x88] sm:$0xff] %vm576_vm2, %v561_v45  ;;  %v544_v50 = vmax.f32 %v386_v46, 0.0  ;;  %v560_v51 = vmax.f32 %v466_v47, 0.0  ;;  %v401_v52 = vadd.f32 %v762_v48, %v951_v37  ;;  %v481_v53 = vadd.f32 %v786_v49, %v951_v37 }
  0xdd   : > { %v395_v54 = vpop.f32.mrf.mxu0  ;;  %v475_v55 = vpop.f32.mrf.mxu1 }
  0xde   : > { %577 = vst.msk [vmem:[%s960_s6] sm:$0xff] %vm576_vm2, %v544_v50  ;;  %593 = vst.msk [vmem:[%s960_s6 + $0x80] sm:$0xff] %vm576_vm2, %v560_v51  ;;  %v547_v56 = vmax.f32 %v401_v52, 0.0  ;;  %v563_v57 = vmax.f32 %v481_v53, 0.0  ;;  %v396_v58 = vadd.f32 %v951_v37, %v395_v54  ;;  %v476_v59 = vadd.f32 %v951_v37, %v475_v55 }
  0xdf   : > { %v765_v60 = vpop.f32.mrf.mxu0  ;;  %v789_v61 = vpop.f32.mrf.mxu1 }
  0xe0   : > { %580 = vst.msk [vmem:[%s960_s6 + $0x18] sm:$0xff] %vm576_vm2, %v547_v56  ;;  %596 = vst.msk [vmem:[%s960_s6 + $0x98] sm:$0xff] %vm576_vm2, %v563_v57  ;;  %v546_v62 = vmax.f32 %v396_v58, 0.0  ;;  %v562_v63 = vmax.f32 %v476_v59, 0.0  ;;  %v411_v0 = vadd.f32 %v765_v60, %v951_v37  ;;  %v491_v1 = vadd.f32 %v789_v61, %v951_v37 }
  0xe1   : > { %v405_v2 = vpop.f32.mrf.mxu0  ;;  %v485_v3 = vpop.f32.mrf.mxu1 }
  0xe2   : > { %579 = vst.msk [vmem:[%s960_s6 + $0x10] sm:$0xff] %vm576_vm2, %v546_v62  ;;  %595 = vst.msk [vmem:[%s960_s6 + $0x90] sm:$0xff] %vm576_vm2, %v562_v63  ;;  %v549_v4 = vmax.f32 %v411_v0, 0.0  ;;  %v565_v5 = vmax.f32 %v491_v1, 0.0  ;;  %v406_v6 = vadd.f32 %v951_v37, %v405_v2  ;;  %v486_v7 = vadd.f32 %v951_v37, %v485_v3 }
  0xe3   : > { %v768_v8 = vpop.f32.mrf.mxu0  ;;  %v792_v9 = vpop.f32.mrf.mxu1 }
  0xe4   : > { %582 = vst.msk [vmem:[%s960_s6 + $0x28] sm:$0xff] %vm576_vm2, %v549_v4  ;;  %598 = vst.msk [vmem:[%s960_s6 + $0xa8] sm:$0xff] %vm576_vm2, %v565_v5  ;;  %v548_v10 = vmax.f32 %v406_v6, 0.0  ;;  %v564_v11 = vmax.f32 %v486_v7, 0.0  ;;  %v421_v12 = vadd.f32 %v768_v8, %v951_v37  ;;  %v501_v13 = vadd.f32 %v792_v9, %v951_v37 }
  0xe5   : > { %v415_v14 = vpop.f32.mrf.mxu0  ;;  %v495_v15 = vpop.f32.mrf.mxu1 }
  0xe6   : > { %581 = vst.msk [vmem:[%s960_s6 + $0x20] sm:$0xff] %vm576_vm2, %v548_v10  ;;  %597 = vst.msk [vmem:[%s960_s6 + $0xa0] sm:$0xff] %vm576_vm2, %v564_v11  ;;  %v551_v16 = vmax.f32 %v421_v12, 0.0  ;;  %v567_v17 = vmax.f32 %v501_v13, 0.0  ;;  %v416_v18 = vadd.f32 %v951_v37, %v415_v14  ;;  %v496_v19 = vadd.f32 %v951_v37, %v495_v15 }
  0xe7   : > { %v771_v20 = vpop.f32.mrf.mxu0  ;;  %v795_v21 = vpop.f32.mrf.mxu1 }
  0xe8   : > { %584 = vst.msk [vmem:[%s960_s6 + $0x38] sm:$0xff] %vm576_vm2, %v551_v16  ;;  %600 = vst.msk [vmem:[%s960_s6 + $0xb8] sm:$0xff] %vm576_vm2, %v567_v17  ;;  %v550_v22 = vmax.f32 %v416_v18, 0.0  ;;  %v566_v23 = vmax.f32 %v496_v19, 0.0  ;;  %v431_v24 = vadd.f32 %v771_v20, %v951_v37  ;;  %v511_v25 = vadd.f32 %v795_v21, %v951_v37 }
  0xe9   : > { %v425_v26 = vpop.f32.mrf.mxu0  ;;  %v505_v27 = vpop.f32.mrf.mxu1 }
  0xea   : > { %583 = vst.msk [vmem:[%s960_s6 + $0x30] sm:$0xff] %vm576_vm2, %v550_v22  ;;  %599 = vst.msk [vmem:[%s960_s6 + $0xb0] sm:$0xff] %vm576_vm2, %v566_v23  ;;  %v553_v28 = vmax.f32 %v431_v24, 0.0  ;;  %v569_v29 = vmax.f32 %v511_v25, 0.0  ;;  %v426_v30 = vadd.f32 %v951_v37, %v425_v26  ;;  %v506_v31 = vadd.f32 %v951_v37, %v505_v27 }
  0xeb   : > { %v774_v32 = vpop.f32.mrf.mxu0  ;;  %v798_v33 = vpop.f32.mrf.mxu1 }
  0xec   : > { %586 = vst.msk [vmem:[%s960_s6 + $0x48] sm:$0xff] %vm576_vm2, %v553_v28  ;;  %602 = vst.msk [vmem:[%s960_s6 + $0xc8] sm:$0xff] %vm576_vm2, %v569_v29  ;;  %v552_v34 = vmax.f32 %v426_v30, 0.0  ;;  %v568_v35 = vmax.f32 %v506_v31, 0.0  ;;  %v441_v36 = vadd.f32 %v774_v32, %v951_v37  ;;  %v521_v38 = vadd.f32 %v798_v33, %v951_v37 }
  0xed   : > { %v435_v39 = vpop.f32.mrf.mxu0  ;;  %v515_v40 = vpop.f32.mrf.mxu1 }
  0xee   : > { %585 = vst.msk [vmem:[%s960_s6 + $0x40] sm:$0xff] %vm576_vm2, %v552_v34  ;;  %601 = vst.msk [vmem:[%s960_s6 + $0xc0] sm:$0xff] %vm576_vm2, %v568_v35  ;;  %v555_v41 = vmax.f32 %v441_v36, 0.0  ;;  %v571_v42 = vmax.f32 %v521_v38, 0.0  ;;  %v436_v43 = vadd.f32 %v951_v37, %v435_v39  ;;  %v516_v44 = vadd.f32 %v951_v37, %v515_v40 }
  0xef   : > { %v777_v45 = vpop.f32.mrf.mxu0  ;;  %v801_v46 = vpop.f32.mrf.mxu1 }
  0xf0   : > { %588 = vst.msk [vmem:[%s960_s6 + $0x58] sm:$0xff] %vm576_vm2, %v555_v41  ;;  %604 = vst.msk [vmem:[%s960_s6 + $0xd8] sm:$0xff] %vm576_vm2, %v571_v42  ;;  %v554_v47 = vmax.f32 %v436_v43, 0.0  ;;  %v570_v48 = vmax.f32 %v516_v44, 0.0  ;;  %v451_v49 = vadd.f32 %v777_v45, %v951_v37  ;;  %v531_v50 = vadd.f32 %v801_v46, %v951_v37 }
  0xf1   : > { %v445_v51 = vpop.f32.mrf.mxu0  ;;  %v525_v52 = vpop.f32.mrf.mxu1 }
  0xf2   : > { %587 = vst.msk [vmem:[%s960_s6 + $0x50] sm:$0xff] %vm576_vm2, %v554_v47  ;;  %603 = vst.msk [vmem:[%s960_s6 + $0xd0] sm:$0xff] %vm576_vm2, %v570_v48  ;;  %v557_v53 = vmax.f32 %v451_v49, 0.0  ;;  %v573_v54 = vmax.f32 %v531_v50, 0.0  ;;  %v446_v55 = vadd.f32 %v951_v37, %v445_v51  ;;  %v526_v56 = vadd.f32 %v951_v37, %v525_v52 }
  0xf3   : > { %v780_v57 = vpop.f32.mrf.mxu0  ;;  %v804_v58 = vpop.f32.mrf.mxu1 }
  0xf4   : > { %590 = vst.msk [vmem:[%s960_s6 + $0x68] sm:$0xff] %vm576_vm2, %v557_v53  ;;  %606 = vst.msk [vmem:[%s960_s6 + $0xe8] sm:$0xff] %vm576_vm2, %v573_v54  ;;  %v556_v59 = vmax.f32 %v446_v55, 0.0  ;;  %v572_v60 = vmax.f32 %v526_v56, 0.0  ;;  %v461_v61 = vadd.f32 %v780_v57, %v951_v37  ;;  %v541_v62 = vadd.f32 %v804_v58, %v951_v37 }
  0xf5   : > { %v455_v63 = vpop.f32.mrf.mxu0  ;;  %v535_v0 = vpop.f32.mrf.mxu1 }
  0xf6   : > { %589 = vst.msk [vmem:[%s960_s6 + $0x60] sm:$0xff] %vm576_vm2, %v556_v59  ;;  %605 = vst.msk [vmem:[%s960_s6 + $0xe0] sm:$0xff] %vm576_vm2, %v572_v60  ;;  %v559_v1 = vmax.f32 %v461_v61, 0.0  ;;  %v575_v2 = vmax.f32 %v541_v62, 0.0  ;;  %v456_v3 = vadd.f32 %v951_v37, %v455_v63  ;;  %v536_v4 = vadd.f32 %v951_v37, %v535_v0 }
  0xf8   : > { %592 = vst.msk [vmem:[%s960_s6 + $0x78] sm:$0xff] %vm576_vm2, %v559_v1  ;;  %608 = vst.msk [vmem:[%s960_s6 + $0xf8] sm:$0xff] %vm576_vm2, %v575_v2  ;;  %v558_v5 = vmax.f32 %v456_v3, 0.0  ;;  %v574_v6 = vmax.f32 %v536_v4, 0.0 }
  0xfa   : > { %591 = vst.msk [vmem:[%s960_s6 + $0x70] sm:$0xff] %vm576_vm2, %v558_v5  ;;  %607 = vst.msk [vmem:[%s960_s6 + $0xf0] sm:$0xff] %vm576_vm2, %v574_v6 }
  0xfb PF: > { %s13_s12 = sadd.s32 1, %s829_s12  }
  0xfc   : > { %p10_p4 = scmp.ge.s32.totalorder %s13_s12, 4  }
  0xfe   :  { %12 = sbr.rel (!%p10_p4) target bundleno = 1 (0x1), region = 62 }

</bundles_post_ra>
